<compile_context>
chip_gen: v7x
topology: tpu7x:2x2x1
jax: 0.10.0
libtpu: 0.0.40
codegen_flags: <defaults>
</compile_context>

<pallas_src>
import functools

import jax
import jax.numpy as jnp
from jax import lax
from jax.experimental import pallas as pl
from jax.experimental.pallas import tpu as pltpu


def _round_up(v, m):
    return (v + m - 1) // m * m


def _round_down(v, m):
    return (v // m) * m


def _int_power(base, n):
    """base ** n for integer n >= 1 via repeated squaring (VALU multiplies only)."""
    result = None
    while n > 0:
        if n & 1:
            result = base if result is None else result * base
        n >>= 1
        if n:
            base = base * base
    return result


def _pnorm(diff, p):
    """|diff| ** p. Skips abs for even integer p; avoids generic pow (EUP) for int p."""
    if isinstance(p, int) and p >= 1:
        if p % 2 == 0:
            return _int_power(diff * diff, p // 2)
        return _int_power(jnp.abs(diff), p)
    return jnp.abs(diff) ** p


def _gradient_loss_kernel(x_ref, out_ref, *, p, W, BC, tbc, chunk, has_tail):
    """One grid step: lane-dense (tbc, H*W) block -> scalar partial sum."""
    L = x_ref.shape[1]
    H = L // W
    n_chunks = tbc // chunk
    block_row0 = pl.program_id(0) * tbc

    # Loop-invariant iotas / masks (hoisted: JAX does not CSE broadcast_in_dim).
    keep_x = None
    if W > 1:
        col_ids = lax.broadcasted_iota(jnp.int32, (1, L - 1), 1)
        keep_x = (col_ids % W) != (W - 1)          # drop row-wrap positions
    row_ids = None
    if has_tail:
        row_ids = lax.broadcasted_iota(jnp.int32, (chunk, 1), 0)

    def chunk_body(c, acc):
        start = c * chunk
        if not isinstance(start, int):
            start = pl.multiple_of(start, chunk)
        xc = x_ref[pl.ds(start, chunk), :]
        if not jnp.issubdtype(xc.dtype, jnp.floating):
            xc = xc.astype(jnp.float32)
        if has_tail:
            # Rows past the real data hold unspecified bytes (partial boundary
            # block): select them to zero BEFORE any arithmetic.  A zero slab
            # contributes exactly 0 to the loss.
            valid = BC - (block_row0 + c * chunk)
            xc = jnp.where(row_ids < valid, xc, jnp.zeros_like(xc))
        if W > 1:
            dx = xc[:, 1:] - xc[:, :-1]            # flat horizontal diffs
            px = _pnorm(dx, p)
            acc = acc + jnp.sum(jnp.where(keep_x, px, jnp.zeros_like(px)),
                                dtype=jnp.float32)
        if H > 1:
            dy = xc[:, W:] - xc[:, :-W]            # vertical diffs, no mask needed
            acc = acc + jnp.sum(_pnorm(dy, p), dtype=jnp.float32)
        return acc

    if n_chunks == 1:
        loss = chunk_body(0, jnp.float32(0.0))
    else:
        loss = lax.fori_loop(0, n_chunks, chunk_body, jnp.float32(0.0))

    out_ref[...] = jnp.reshape(loss, (1, 1, 1))


_DEFAULT_VMEM_LIMIT = 48 * 1024 * 1024     # safe on every generation (v7x = 64 MiB phys)


def _vmem_limit_bytes():
    """~3/4 of physical VMEM, clamped to [32, 96] MiB; 48 MiB if the query fails."""
    cap = None
    try:
        cap = getattr(pltpu.get_tpu_info(), "vmem_capacity_bytes", None)
    except Exception:
        cap = None
    if not cap:
        return _DEFAULT_VMEM_LIMIT
    return int(max(32 * 1024 * 1024, min(cap * 3 // 4, 96 * 1024 * 1024)))


def _gradient_loss_jax(x, p, reduction):
    """Plain-JAX fallback for slabs too large for the batch*channel-tiled kernel."""
    # TODO(synk): replace with an H-tiled Pallas kernel using a 1-row halo.
    diff_x = jnp.abs(x[:, :, :, 1:] - x[:, :, :, :-1])
    diff_y = jnp.abs(x[:, :, 1:, :] - x[:, :, :-1, :])
    if p != 1:
        diff_x = diff_x ** p
        diff_y = diff_y ** p
    loss = jnp.sum(diff_x, dtype=jnp.float32) + jnp.sum(diff_y, dtype=jnp.float32)
    if reduction == 'mean':
        loss = loss / jnp.float32(diff_x.size + diff_y.size)
    return loss


def gradient_loss(x, p=2, reduction='mean'):
    """Pallas implementation of GradientLoss.forward. x: [B, C, H, W]."""
    if reduction not in ('mean', 'sum'):
        raise ValueError(
            f"reduction must be 'mean' or 'sum', got {reduction!r}")
    # p=2.0 must take the integer (VALU) path, not the EUP pow path.
    if isinstance(p, float) and p.is_integer():
        p = int(p)

    B, C, H, W = x.shape
    BC, L = B * C, H * W
    # numel(diff_x) + numel(diff_y), exactly as in the PyTorch module.
    num_elements = BC * H * (W - 1) + BC * (H - 1) * W

    itemsize = x.dtype.itemsize
    padded_L = _round_up(L, 128)
    vmem_limit = _vmem_limit_bytes()

    # If even the smallest legal block (8 rows, or BC rows when BC < 8) plus its
    # double buffer and per-chunk f32 temporaries cannot fit, use the fallback.
    min_rows = BC if BC <= 8 else 8
    min_footprint = 2 * min_rows * padded_L * itemsize + 3 * min_rows * padded_L * 4
    if min_footprint > vmem_limit:
        return _gradient_loss_jax(x, p, reduction)

    x_flat = x.reshape(BC, L)                    # lane-dense view, no copy

    target_block_bytes = 4 * 1024 * 1024
    if BC <= 8:
        tbc = BC                                  # block dim == full dim is legal
        chunk = BC
    else:
        tbc = target_block_bytes // (padded_L * itemsize)
        tbc = max(8, min(_round_down(tbc, 8), _round_down(BC, 8)))
        if -(-BC // tbc) < 2:                     # give both v7x TensorCores work
            half = _round_down(BC // 2, 8)
            if half >= 8:
                tbc = half
        # Largest multiple of 8 dividing tbc with <= ~512 KiB of f32 temporaries.
        chunk_cap = max(1, (512 * 1024) // (padded_L * 4) // 8)
        m = tbc // 8
        chunk = 8
        for d in range(min(m, chunk_cap), 0, -1):
            if m % d == 0:
                chunk = d * 8
                break

    num_blocks = -(-BC // tbc)
    has_tail = (BC % tbc) != 0

    kernel = functools.partial(
        _gradient_loss_kernel, p=p, W=W, BC=BC, tbc=tbc, chunk=chunk,
        has_tail=has_tail)

    numel = BC * L
    cost = pl.CostEstimate(
        flops=6 * numel,
        transcendentals=0 if isinstance(p, int) else 2 * numel,
        bytes_accessed=numel * itemsize + num_blocks * 4)

    partials = pl.pallas_call(
        kernel,
        out_shape=jax.ShapeDtypeStruct((num_blocks, 1, 1), jnp.float32),
        grid=(num_blocks,),
        in_specs=[pl.BlockSpec((tbc, L), lambda i: (i, 0))],
        out_specs=pl.BlockSpec((1, 1, 1), lambda i: (i, 0, 0)),
        compiler_params=pltpu.CompilerParams(
            dimension_semantics=("parallel",),
            vmem_limit_bytes=vmem_limit),
        cost_estimate=cost,
    )(x_flat)

    loss = jnp.sum(partials)
    if reduction == 'mean':
        loss = loss / jnp.float32(num_elements)
    return loss


def _gradient_loss_ref(x, p=2, reduction='mean'):
    """Pure-JAX reference mirroring the PyTorch module (for verification)."""
    diff_x = jnp.abs(x[:, :, :, 1:] - x[:, :, :, :-1])
    diff_y = jnp.abs(x[:, :, 1:, :] - x[:, :, :-1, :])
    if p == 1:
        loss_x, loss_y = diff_x, diff_y
    else:
        loss_x, loss_y = diff_x ** p, diff_y ** p
    loss = loss_x.sum() + loss_y.sum()
    if reduction == 'mean':
        loss = loss / (loss_x.size + loss_y.size)
    return loss


if __name__ == "__main__":
    key = jax.random.PRNGKey(0)
    x = jax.random.normal(key, (2, 4, 16, 16), dtype=jnp.float32)

    # Module defaults plus p=1/'sum', float p spelling and an odd integer p.
    for p, reduction in ((2, 'mean'), (1, 'sum'), (2.0, 'mean'), (3, 'sum')):
        got = jax.block_until_ready(gradient_loss(x, p=p, reduction=reduction))
        want = _gradient_loss_ref(x, p=p, reduction=reduction)
        assert jnp.allclose(got, want, rtol=1e-5, atol=1e-5), (
            p, reduction, got, want)

    # BC not a multiple of the block size: exercises the in-kernel tail masking.
    x2 = jax.random.normal(jax.random.PRNGKey(1), (3, 3, 16, 16), jnp.float32)
    got = jax.block_until_ready(gradient_loss(x2))
    want = _gradient_loss_ref(x2)
    assert jnp.allclose(got, want, rtol=1e-5, atol=1e-5), (got, want)

    # Larger slab: exercises the multi-chunk fori_loop path + tail + 2 blocks.
    x3 = jax.random.normal(jax.random.PRNGKey(2), (3, 17, 64, 256), jnp.float32)
    got = jax.block_until_ready(gradient_loss(x3))
    want = _gradient_loss_ref(x3)
    assert jnp.allclose(got, want, rtol=1e-4, atol=1e-4), (got, want)

    print("KERNEL_OK")
</pallas_src>

<mosaic_0001>
module attributes {stable_mosaic.version = 11 : i64} {
  func.func @_gradient_loss_kernel(%arg0: i32, %arg1: memref<8x256xf32, #tpu.memory_space<vmem>>, %arg2: memref<1x1x1xf32, #tpu.memory_space<vmem>>) attributes {dimension_semantics = [#tpu.dimension_semantics<parallel>], iteration_bounds = array<i64: 1>, scalar_prefetch = 0 : i64, scratch_operands = 0 : i64, tpu.core_type = #tpu.core_type<tc>, window_params = [{transform_indices = @transform_0, window_bounds = array<i64: 8, 256>}, {transform_indices = @transform_1, window_bounds = array<i64: 1, 1, 1>}]} {
    %0 = tpu.iota {dimensions = array<i32: 1>} : vector<1x255xi32>
    %c16_i32 = arith.constant 16 : i32
    %c0_i32 = arith.constant 0 : i32
    %1 = arith.cmpi eq, %c16_i32, %c0_i32 : i32
    %c1_i32 = arith.constant 1 : i32
    %2 = arith.select %1, %c1_i32, %c16_i32 : i32
    %3 = vector.broadcast %2 : i32 to vector<1x255xi32>
    %4 = arith.remsi %0, %3 : vector<1x255xi32>
    %c0_i32_0 = arith.constant 0 : i32
    %5 = vector.broadcast %c0_i32_0 : i32 to vector<1x255xi32>
    %6 = arith.cmpi ne, %4, %5 : vector<1x255xi32>
    %c0_i32_1 = arith.constant 0 : i32
    %7 = vector.broadcast %c0_i32_1 : i32 to vector<1x255xi32>
    %8 = arith.cmpi slt, %4, %7 : vector<1x255xi32>
    %c0_i32_2 = arith.constant 0 : i32
    %9 = arith.cmpi slt, %2, %c0_i32_2 : i32
    %10 = vector.broadcast %9 : i1 to vector<1x255xi1>
    %11 = vector.broadcast %10 : vector<1x255xi1> to vector<1x255xi1>
    %12 = arith.xori %8, %11 : vector<1x255xi1>
    %13 = arith.andi %12, %6 : vector<1x255xi1>
    %14 = vector.broadcast %2 : i32 to vector<1x255xi32>
    %15 = arith.addi %4, %14 : vector<1x255xi32>
    %16 = arith.select %13, %15, %4 : vector<1x255xi1>, vector<1x255xi32>
    %c15_i32 = arith.constant 15 : i32
    %17 = vector.broadcast %c15_i32 : i32 to vector<1x255xi32>
    %18 = arith.cmpi ne, %16, %17 : vector<1x255xi32>
    %c0 = arith.constant 0 : index
    %c0_3 = arith.constant 0 : index
    %19 = vector.load %arg1[%c0, %c0_3] : memref<8x256xf32, #tpu.memory_space<vmem>>, vector<8x256xf32>
    %20 = vector.extract_strided_slice %19 {offsets = [0, 1], sizes = [8, 255], strides = [1, 1]} : vector<8x256xf32> to vector<8x255xf32>
    %21 = vector.extract_strided_slice %19 {offsets = [0, 0], sizes = [8, 255], strides = [1, 1]} : vector<8x256xf32> to vector<8x255xf32>
    %22 = arith.subf %20, %21 : vector<8x255xf32>
    %23 = arith.mulf %22, %22 : vector<8x255xf32>
    %cst = arith.constant 0.000000e+00 : f32
    %24 = vector.broadcast %cst : f32 to vector<8x255xf32>
    %25 = vector.shape_cast %18 : vector<1x255xi1> to vector<1x255xi1>
    %26 = vector.broadcast %25 : vector<1x255xi1> to vector<8x255xi1>
    %27 = arith.select %26, %23, %24 : vector<8x255xi1>, vector<8x255xf32>
    %28 = vector.shape_cast %27 : vector<8x255xf32> to vector<1x8x255xf32>
    %cst_4 = arith.constant dense<0.000000e+00> : vector<1xf32>
    %29 = vector.multi_reduction <add>, %28, %cst_4 [1, 2] : vector<1x8x255xf32> to vector<1xf32>
    %30 = vector.shape_cast %29 : vector<1xf32> to vector<1x1x1xf32>
    %31 = vector.extract %30[0, 0, 0] : f32 from vector<1x1x1xf32>
    %cst_5 = arith.constant 0.000000e+00 : f32
    %32 = arith.addf %cst_5, %31 : f32
    %33 = vector.extract_strided_slice %19 {offsets = [0, 16], sizes = [8, 240], strides = [1, 1]} : vector<8x256xf32> to vector<8x240xf32>
    %34 = vector.extract_strided_slice %19 {offsets = [0, 0], sizes = [8, 240], strides = [1, 1]} : vector<8x256xf32> to vector<8x240xf32>
    %35 = arith.subf %33, %34 : vector<8x240xf32>
    %36 = arith.mulf %35, %35 : vector<8x240xf32>
    %37 = vector.shape_cast %36 : vector<8x240xf32> to vector<1x8x240xf32>
    %cst_6 = arith.constant dense<0.000000e+00> : vector<1xf32>
    %38 = vector.multi_reduction <add>, %37, %cst_6 [1, 2] : vector<1x8x240xf32> to vector<1xf32>
    %39 = vector.shape_cast %38 : vector<1xf32> to vector<1x1x1xf32>
    %40 = vector.extract %39[0, 0, 0] : f32 from vector<1x1x1xf32>
    %41 = arith.addf %32, %40 : f32
    %42 = vector.broadcast %41 : f32 to vector<1x1x1xf32>
    %c0_7 = arith.constant 0 : index
    %c0_8 = arith.constant 0 : index
    %c0_9 = arith.constant 0 : index
    %43 = vector.load %arg2[%c0_7, %c0_8, %c0_9] : memref<1x1x1xf32, #tpu.memory_space<vmem>>, vector<1x1x1xf32>
    tpu.vector_store %arg2[%c0_7, %c0_8, %c0_9], %42 {strides = array<i32>} : memref<1x1x1xf32, #tpu.memory_space<vmem>>, vector<1x1x1xf32>,
    return
  }
  func.func @transform_0(%arg0: i32) -> (i32, i32) {
    %c0_i32 = arith.constant 0 : i32
    %c0_i32_0 = arith.constant 0 : i32
    return %arg0, %c0_i32 : i32, i32
  }
  func.func @transform_1(%arg0: i32) -> (i32, i32, i32) {
    %c0_i32 = arith.constant 0 : i32
    %c0_i32_0 = arith.constant 0 : i32
    %c0_i32_1 = arith.constant 0 : i32
    return %arg0, %c0_i32, %c0_i32_0 : i32, i32, i32
  }
}

</mosaic_0001>

<bundles_post_ra>
// kernel: tpu_custom_call.1
= control target key start
LH: loop header
LB: loop body
LE: loop exit
PB: predicated region body
PF: predicated region fallthrough
CT: control target
= control target key end

     0   :  { %6 = vsyncpa [#allocation3], 0  ;;  %s244_s0 = inlined_call_operand.hbm [shape: f32[8,256], index: 0, kind: input, shape index: {}]   ;;  %s245_s1 = inlined_call_operand.hbm [shape: f32[1,1,1], index: 1, kind: output, shape index: {}]  }
   0x1   :  { %7 = vsyncpa [#allocation4], 0  ;;  %s204_s6 = smov [#allocation2]   ;;  %s156_s10 = scalar_lea.hbm %s244_s0, 256 }
   0x2   :  { %s14_s7 = sshll.u32 %s204_s6, 4  ;;  %p157_p0 = scmp.ne.s32.totalorder %s244_s0, %s156_s10  ;;  %s15_s7 = int_to_ptr.vmem [resolvable:$true] %s14_s7 }
   0x3   :  { %p160_p1 = scmp.lt.u32.totalorder %s156_s10, %s244_s0 }
   0x5   :  { %p162_p2 = pnand %p160_p1, %p157_p0 }
   0x7   :  { %165 = shalt.err (!%p162_p2)
}
   0x8   :  { %s166_s15 = scalar_lea.vmem %s15_s7, 256  ;;  %p171_p4 = scmp.lt.s32.totalorder %s15_s7, %s15_s7 }
   0x9   :  { %p167_p3 = scmp.ne.s32.totalorder %s15_s7, %s166_s15  ;;  %p172_p5 = scmp.lt.s32.totalorder %s166_s15, %s166_s15 }
   0xb   :  { %p173_p6 = por %p172_p5, %p171_p4 }
   0xd   :  { %p174_p7 = pnand %p173_p6, %p167_p3 }
   0xf   :  { %177 = shalt.err (!%p174_p7)
}
  0x10   :  { %17 = dma.hbm_to_vmem [thread:$0]  %s244_s0, 256, %s15_s7, [#allocation3]  }
  0x11   :  { %200 = dma.done.wait [#allocation3], 256  }
  0x12   :  { %201 = vsyncadd [#allocation3], 4294967040  ;;  %v50_v0 = vld [vmem:[#allocation2] sm:$0xff]  ;;  %s205_s18 = smov 16   ;;  %s206_s19 = smov 1   ;;  %v51_v1 = vld [vmem:[#allocation2 + $0x8] sm:$0xff]  ;;  %v21_v16 = vlaneseq }
  0x13   :  { %94 = vrot.lane.b32.xlu1 %v50_v0, %s205_s18  ;;  %54 = vrot.lane.b32.xlu0 %v50_v0, %s206_s19  ;;  %vm98_vm0 = vcmask 130048   ;;  %vm58_vm1 = vcmask 7168   ;;  %s207_s0 = smov 127   ;;  %s208_s20 = smov 112   ;;  %vm76_vm3 = vcmask 1039360   ;;  %vm112_vm5 = vcmask 916480  }
  0x14   :  { %v22_v17 = vand.u32 127, %v21_v16  ;;  %s209_s22 = smov [#allocation5]   ;;  %vm129_vm6 = vcmask 0  }
  0x15   :  { %s137_s23 = sshll.u32 %s209_s22, 4  ;;  %s138_s23 = int_to_ptr.vmem [resolvable:$true] %s137_s23 }
  0x16   :  { %v23_v18 = vadd.s32 128, %v22_v17  ;;  %v28_v20 = vand.u32 15, %v22_v17  ;;  %s178_s26 = scalar_lea.vmem %s138_s23, 16  ;;  %s182_s27 = scalar_lea.vmem %s138_s23, 32 }
  0x17   :  { %96 = vrot.lane.b32.xlu1 %v51_v1, %s205_s18  ;;  %56 = vrot.lane.b32.xlu0 %v51_v1, %s206_s19  ;;  %p179_p8 = scmp.ne.s32.totalorder %s138_s23, %s178_s26  ;;  %p183_p9 = scmp.lt.s32.totalorder %s138_s23, %s138_s23 }
  0x18   :  { %v35_v19 = vand.u32 15, %v23_v18  ;;  %vm48_vm4 = vcmp.ne.s32.totalorder %v28_v20, 15  ;;  %p184_p10 = scmp.lt.s32.totalorder %s182_s27, %s178_s26 }
  0x1a   :  { %vm49_vm2 = vcmp.ne.s32.totalorder %v35_v19, 15  ;;  %p185_p11 = por %p184_p10, %p183_p9 }
  0x1c   :  { %p186_p12 = pnand %p185_p11, %p179_p8 }
  0x85   :  { %v95_v2 = vpop.permute.xlu1 %94  ;;  %v55_v3 = vpop.permute.xlu0 %54 }
  0x86   :  { %v102_v4 = vsub.f32 %v50_v0, %v95_v2  ;;  %v62_v5 = vsub.f32 %v50_v0, %v55_v3 }
  0x88   :  { %v64_v6 = vmul.f32 %v62_v5, %v62_v5  ;;  %v104_v9 = vmul.f32 %v102_v4, %v102_v4 }
  0x89   :  { %v97_v7 = vpop.permute.xlu1 %96  ;;  %v57_v8 = vpop.permute.xlu0 %56 }
  0x8a   :  { %v99_v10 = vsel %vm98_vm0, %v95_v2, %v97_v7  ;;  %v59_v11 = vsel %vm58_vm1, %v55_v3, %v57_v8  ;;  %72 = vrot.lane.b32.xlu0 %v64_v6, %s207_s0 }
  0x8b   :  { %v63_v12 = vsub.f32 %v51_v1, %v59_v11  ;;  %v103_v13 = vsub.f32 %v51_v1, %v99_v10 }
  0x8d   :  { %v65_v14 = vmul.f32 %v63_v12, %v63_v12  ;;  %v105_v15 = vmul.f32 %v103_v13, %v103_v13 }
  0x8e   :  { %108 = vrot.lane.b32.xlu0 %v104_v9, %s208_s20 }
  0x8f   :  { %74 = vrot.lane.b32.xlu1 %v65_v14, %s207_s0 }
  0x93   :  { %110 = vrot.lane.b32.xlu1 %v105_v15, %s208_s20 }
  0xfc   :  { %v73_v21 = vpop.permute.xlu0 %72 }
 0x100   :  { %v109_v28 = vpop.permute.xlu0 %108 }
 0x101   :  { %v75_v22 = vpop.permute.xlu1 %74 }
 0x102   :  { %v77_v23 = vsel %vm76_vm3, %v73_v21, %v75_v22  ;;  %v81_v24 = vsel %vm49_vm2, %v75_v22, 0.0 }
 0x103   :  { %v80_v25 = vsel %vm48_vm4, %v77_v23, 0.0  ;;  %v82_v26 = vsel %vm76_vm3, %v81_v24, 0.0 }
 0x104   :  { %v83_v27 = vadd.f32 %v82_v26, %v80_v25 }
 0x105   :  { %v111_v29 = vpop.permute.xlu1 %110 }
 0x106   :  { %v113_v30 = vsel %vm112_vm5, %v109_v28, %v111_v29  ;;  %v116_v31 = vsel %vm112_vm5, %v111_v29, 0.0  ;;  %84 = vadd.xlane.f32.xlu0 %v83_v27 }
 0x107   :  { %v117_v32 = vadd.f32 %v116_v31, %v113_v30 }
 0x109   :  { %118 = vadd.xlane.f32.xlu1 %v117_v32 }
 0x193   :  { %v85_v33 = vpop.xlane.xlu0 %84 }
 0x194   :  { %v86_v34 = vrot.slane %v85_v33, 4 }
 0x196   :  { %v87_v35 = vadd.f32 %v86_v34, %v85_v33  ;;  %v119_v36 = vpop.xlane.xlu1 %118 }
 0x197   :  { %v120_v37 = vrot.slane %v119_v36, 4 }
 0x198   :  { %v88_v38 = vrot.slane %v87_v35, 2 }
 0x199   :  { %v121_v39 = vadd.f32 %v120_v37, %v119_v36 }
 0x19a   :  { %v89_v40 = vadd.f32 %v88_v38, %v87_v35 }
 0x19b   :  { %v122_v41 = vrot.slane %v121_v39, 2 }
 0x19c   :  { %v90_v42 = vrot.slane %v89_v40, 1 }
 0x19d   :  { %v123_v43 = vadd.f32 %v122_v41, %v121_v39 }
 0x19e   :  { %v91_v44 = vadd.f32 %v90_v42, %v89_v40 }
 0x19f   :  { %v124_v45 = vrot.slane %v123_v43, 1 }
 0x1a0   :  { %146 = vpush %v91_v44 }
 0x1a1   :  { %v125_v46 = vadd.f32 %v124_v45, %v123_v43 }
 0x1a3   :  { %148 = vpush %v125_v46 }
 0x1d1   :  { %s147_s21 = spop %146 }
 0x1d4   :  { %s149_s24 = spop %148 }
 0x1d5   :  { %s127_s25 = sadd.f32 %s149_s24, %s147_s21 }
 0x1d7   :  { %v128_v47 = vstv %s127_s25 }
 0x1d8   :  { %130 = vst.msk [vmem:[#allocation5] sm:$0x1] %vm129_vm6, %v128_v47 }
 0x1d9   :  { %189 = shalt.err (!%p186_p12)
}
 0x1da   :  { %s190_s30 = scalar_lea.hbm %s245_s1, 16 }
 0x1db   :  { %p191_p13 = scmp.ne.s32.totalorder %s245_s1, %s190_s30  ;;  %p194_p0 = scmp.lt.u32.totalorder %s190_s30, %s245_s1 }
 0x1dd   :  { %p196_p1 = pnand %p194_p0, %p191_p13 }
 0x1df   :  { %199 = shalt.err (!%p196_p1)
}
 0x1e0   :  { %140 = dma.vmem_to_hbm [thread:$0]  %s138_s23, 16, %s245_s1, [#allocation4]  }
 0x1e1   :  { %202 = dma.done.wait [#allocation4], 16  }
 0x1e2   :  { %203 = vsyncadd [#allocation4], 4294967280 }
 0x1e3   :  { %144 = vsyncpa [#allocation3], 1 }
 0x1e4   :  { %145 = vsyncpa [#allocation4], 1 }

</bundles_post_ra>
